<compile_context>
chip_gen: v7x
topology: tpu7x:2x2x1
jax: 0.10.0
libtpu: 0.0.40
codegen_flags: <defaults>
</compile_context>

<pallas_src>
import jax
import jax.numpy as jnp
from jax import lax
from jax.experimental import pallas as pl
from jax.experimental.pallas import tpu as pltpu

WORD_DIM = 128   # word embedding dim (lane-aligned)
POS_DIM = 128    # position embedding dim (lane-aligned)


def _embed_concat_kernel(wids_ref, pids_ref, wtbl_ref, ptbl_ref, out_ref):
    # wids_ref / pids_ref : (T, 1) int32 ids for this token tile
    # wtbl_ref            : (V, Dw) word table, VMEM-resident across the grid
    # ptbl_ref            : (P, Dp) position table, VMEM-resident across the grid
    # out_ref             : (T, Dw + Dp) concatenated output tile
    T = out_ref.shape[0]
    V, Dw = wtbl_ref.shape
    P, _ = ptbl_ref.shape

    wid = wids_ref[...]          # (T, 1) int32
    pid = pids_ref[...]          # (T, 1) int32

    # One-hot gather on the MXU (small tables live entirely in VMEM).
    w_onehot = (wid == lax.broadcasted_iota(jnp.int32, (T, V), 1)).astype(
        wtbl_ref.dtype)
    p_onehot = (pid == lax.broadcasted_iota(jnp.int32, (T, P), 1)).astype(
        ptbl_ref.dtype)

    w_rows = jnp.dot(w_onehot, wtbl_ref[...],
                     preferred_element_type=jnp.float32,
                     precision=lax.Precision.HIGHEST)
    p_rows = jnp.dot(p_onehot, ptbl_ref[...],
                     preferred_element_type=jnp.float32,
                     precision=lax.Precision.HIGHEST)

    out_ref[:, :Dw] = w_rows.astype(out_ref.dtype)
    out_ref[:, Dw:] = p_rows.astype(out_ref.dtype)


def word_embedding_forward(input_ids, word_table, pos_table,
                           position_ids=None, *, tile_tokens=256):
    """Pallas equivalent of WordEmbedding.forward (inference)."""
    B, S = input_ids.shape
    V, Dw = word_table.shape
    P, Dp = pos_table.shape
    assert Dw == WORD_DIM and Dp == POS_DIM
    assert word_table.dtype == pos_table.dtype, "tables must share a dtype"

    if position_ids is None:
        # position_ids = self.position_ids[:, :seq_length].expand(batch, seq)
        position_ids = jnp.broadcast_to(
            jnp.arange(S, dtype=jnp.int32)[None, :], (B, S))

    n = B * S
    # Token tile: multiple of 8 sublanes, no larger than needed.
    T = int(min(tile_tokens, 8 * pl.cdiv(n, 8)))
    T = max(8, (T // 8) * 8)
    n_tiles = pl.cdiv(n, T)
    n_pad = n_tiles * T

    wids = jnp.zeros((n_pad,), jnp.int32).at[:n].set(
        input_ids.reshape(n).astype(jnp.int32))
    pids = jnp.zeros((n_pad,), jnp.int32).at[:n].set(
        position_ids.reshape(n).astype(jnp.int32))
    wids_col = wids.reshape(n_pad, 1)
    pids_col = pids.reshape(n_pad, 1)

    Dout = Dw + Dp
    itemsize = word_table.dtype.itemsize
    table_bytes = (word_table.size + pos_table.size) * itemsize
    out_tile_bytes = T * Dout * itemsize
    # tables + double-buffered output/id tiles + slack, capped for v7x's 64 MiB.
    vmem_limit = int(min(max(table_bytes + 8 * out_tile_bytes + (4 << 20),
                             16 << 20), 56 << 20))

    grid_spec = pltpu.PrefetchScalarGridSpec(
        num_scalar_prefetch=0,
        grid=(n_tiles,),
        in_specs=[
            pl.BlockSpec((T, 1), lambda i: (i, 0)),      # word ids for tile i
            pl.BlockSpec((T, 1), lambda i: (i, 0)),      # position ids for tile i
            pl.BlockSpec((V, Dw), lambda i: (0, 0)),     # VMEM-resident word table
            pl.BlockSpec((P, Dp), lambda i: (0, 0)),     # VMEM-resident pos table
        ],
        out_specs=pl.BlockSpec((T, Dout), lambda i: (i, 0)),
    )

    out_flat = pl.pallas_call(
        _embed_concat_kernel,
        out_shape=jax.ShapeDtypeStruct((n_pad, Dout), word_table.dtype),
        grid_spec=grid_spec,
        compiler_params=pltpu.CompilerParams(
            dimension_semantics=("parallel",),   # independent token tiles
            vmem_limit_bytes=vmem_limit),
    )(wids_col, pids_col, word_table, pos_table)

    # TODO(synk): for vocabularies too large to keep VMEM-resident
    # (V*Dw*itemsize > ~48 MiB), replace the one-hot MXU gather with a manual
    # double-buffered per-row DMA gather (tables in pl.ANY + make_async_copy).
    # TODO(synk): nn.Dropout is identity at inference; training-mode dropout
    # would use pltpu.prng_seed + pltpu.stateful_bernoulli inside the kernel.
    return out_flat[:n].reshape(B, S, Dout)


def _build_params(key, pretrained_vocab, vocab_size, num_positions):
    """Deterministic parameter construction mirroring __init__ + resize."""
    k_word, k_pos = jax.random.split(key)
    # "pretrained" word embeddings (stand-in for the vocab file load)
    pretrained = jax.random.normal(k_word, (pretrained_vocab, WORD_DIM),
                                   dtype=jnp.float32)
    # resize_token_embeddings: append the mean row for the added tokens
    num_added = vocab_size - pretrained_vocab
    avg = jnp.mean(pretrained, axis=0, keepdims=True)
    word_table = jnp.concatenate(
        [pretrained, jnp.broadcast_to(avg, (num_added, WORD_DIM))], axis=0)
    # nn.Embedding(num_position_embeddings, position_embedding_dim)
    pos_table = jax.random.normal(k_pos, (num_positions, POS_DIM),
                                  dtype=jnp.float32) * 0.02
    return word_table, pos_table


if __name__ == "__main__":
    key = jax.random.PRNGKey(0)
    k_params, k_ids = jax.random.split(key)

    B, S = 2, 8
    PRETRAINED_VOCAB, VOCAB_SIZE = 48, 64
    NUM_POSITIONS = 16

    word_table, pos_table = _build_params(
        k_params, PRETRAINED_VOCAB, VOCAB_SIZE, NUM_POSITIONS)

    input_ids = jax.random.randint(k_ids, (B, S), 0, VOCAB_SIZE,
                                   dtype=jnp.int32)

    # tile_tokens=8 so the small test exercises multiple grid steps (grid=(2,))
    out = word_embedding_forward(input_ids, word_table, pos_table,
                                 tile_tokens=8)
    out = jax.block_until_ready(out)

    # pure-JAX reference (gather + gather + concat)
    pos_ids = jnp.broadcast_to(jnp.arange(S, dtype=jnp.int32)[None, :], (B, S))
    ref = jnp.concatenate(
        [jnp.take(word_table, input_ids, axis=0),
         jnp.take(pos_table, pos_ids, axis=0)], axis=-1)

    assert out.shape == (B, S, WORD_DIM + POS_DIM)
    assert jnp.allclose(out, ref, atol=1e-5, rtol=1e-5), "mismatch vs reference"
    print("KERNEL_OK")
</pallas_src>

<mosaic_0001>
module attributes {stable_mosaic.version = 11 : i64} {
  func.func @_embed_concat_kernel(%arg0: i32, %arg1: memref<8x1xi32, #tpu.memory_space<vmem>>, %arg2: memref<8x1xi32, #tpu.memory_space<vmem>>, %arg3: memref<64x128xf32, #tpu.memory_space<vmem>>, %arg4: memref<16x128xf32, #tpu.memory_space<vmem>>, %arg5: memref<8x256xf32, #tpu.memory_space<vmem>>) attributes {dimension_semantics = [#tpu.dimension_semantics<parallel>], iteration_bounds = array<i64: 2>, scalar_prefetch = 0 : i64, scratch_operands = 0 : i64, tpu.core_type = #tpu.core_type<tc>, window_params = [{transform_indices = @transform_0, window_bounds = array<i64: 8, 1>}, {transform_indices = @transform_1, window_bounds = array<i64: 8, 1>}, {pipeline_mode = #tpu.pipeline_mode<synchronous>, transform_indices = @transform_2, window_bounds = array<i64: 64, 128>}, {pipeline_mode = #tpu.pipeline_mode<synchronous>, transform_indices = @transform_3, window_bounds = array<i64: 16, 128>}, {transform_indices = @transform_4, window_bounds = array<i64: 8, 256>}]} {
    %c0 = arith.constant 0 : index
    %c0_0 = arith.constant 0 : index
    %0 = vector.load %arg1[%c0, %c0_0] : memref<8x1xi32, #tpu.memory_space<vmem>>, vector<8x1xi32>
    %c0_1 = arith.constant 0 : index
    %c0_2 = arith.constant 0 : index
    %1 = vector.load %arg2[%c0_1, %c0_2] : memref<8x1xi32, #tpu.memory_space<vmem>>, vector<8x1xi32>
    %2 = tpu.iota {dimensions = array<i32: 1>} : vector<8x64xi32>
    %3 = vector.broadcast %0 : vector<8x1xi32> to vector<8x64xi32>
    %4 = arith.cmpi eq, %3, %2 : vector<8x64xi32>
    %5 = arith.extui %4 : vector<8x64xi1> to vector<8x64xi32>
    %6 = arith.sitofp %5 : vector<8x64xi32> to vector<8x64xf32>
    %7 = tpu.iota {dimensions = array<i32: 1>} : vector<8x16xi32>
    %8 = vector.broadcast %1 : vector<8x1xi32> to vector<8x16xi32>
    %9 = arith.cmpi eq, %8, %7 : vector<8x16xi32>
    %10 = arith.extui %9 : vector<8x16xi1> to vector<8x16xi32>
    %11 = arith.sitofp %10 : vector<8x16xi32> to vector<8x16xf32>
    %c0_3 = arith.constant 0 : index
    %c0_4 = arith.constant 0 : index
    %12 = vector.load %arg3[%c0_3, %c0_4] : memref<64x128xf32, #tpu.memory_space<vmem>>, vector<64x128xf32>
    %cst = arith.constant dense<0.000000e+00> : vector<8x128xf32>
    %13 = tpu.matmul %6, %12, %cst {dimension_numbers = #tpu.dot_dimension_numbers<[1], [0], [0], [1], [0, 0, 1, 1], [], []>, precision = #tpu.contract_precision<fp32>} : vector<8x64xf32>, vector<64x128xf32>, vector<8x128xf32> -> vector<8x128xf32>
    %c0_5 = arith.constant 0 : index
    %c0_6 = arith.constant 0 : index
    %14 = vector.load %arg4[%c0_5, %c0_6] : memref<16x128xf32, #tpu.memory_space<vmem>>, vector<16x128xf32>
    %cst_7 = arith.constant dense<0.000000e+00> : vector<8x128xf32>
    %15 = tpu.matmul %11, %14, %cst_7 {dimension_numbers = #tpu.dot_dimension_numbers<[1], [0], [0], [1], [0, 0, 1, 1], [], []>, precision = #tpu.contract_precision<fp32>} : vector<8x16xf32>, vector<16x128xf32>, vector<8x128xf32> -> vector<8x128xf32>
    %c0_8 = arith.constant 0 : index
    %c0_9 = arith.constant 0 : index
    %16 = vector.load %arg5[%c0_8, %c0_9] : memref<8x256xf32, #tpu.memory_space<vmem>>, vector<8x128xf32>
    tpu.vector_store %arg5[%c0_8, %c0_9], %13 {strides = array<i32>} : memref<8x256xf32, #tpu.memory_space<vmem>>, vector<8x128xf32>,
    %c0_10 = arith.constant 0 : index
    %c128 = arith.constant 128 : index
    %17 = vector.load %arg5[%c0_10, %c128] : memref<8x256xf32, #tpu.memory_space<vmem>>, vector<8x128xf32>
    tpu.vector_store %arg5[%c0_10, %c128], %15 {strides = array<i32>} : memref<8x256xf32, #tpu.memory_space<vmem>>, vector<8x128xf32>,
    return
  }
  func.func @transform_0(%arg0: i32) -> (i32, i32) {
    %c0_i32 = arith.constant 0 : i32
    %c0_i32_0 = arith.constant 0 : i32
    return %arg0, %c0_i32 : i32, i32
  }
  func.func @transform_1(%arg0: i32) -> (i32, i32) {
    %c0_i32 = arith.constant 0 : i32
    %c0_i32_0 = arith.constant 0 : i32
    return %arg0, %c0_i32 : i32, i32
  }
  func.func @transform_2(%arg0: i32) -> (i32, i32) {
    %c0_i32 = arith.constant 0 : i32
    %c0_i32_0 = arith.constant 0 : i32
    %c0_i32_1 = arith.constant 0 : i32
    return %c0_i32, %c0_i32_0 : i32, i32
  }
  func.func @transform_3(%arg0: i32) -> (i32, i32) {
    %c0_i32 = arith.constant 0 : i32
    %c0_i32_0 = arith.constant 0 : i32
    %c0_i32_1 = arith.constant 0 : i32
    return %c0_i32, %c0_i32_0 : i32, i32
  }
  func.func @transform_4(%arg0: i32) -> (i32, i32) {
    %c0_i32 = arith.constant 0 : i32
    %c0_i32_0 = arith.constant 0 : i32
    return %arg0, %c0_i32 : i32, i32
  }
}

</mosaic_0001>

<bundles_post_ra>
// kernel: tpu_custom_call.1
= control target key start
LH: loop header
LB: loop body
LE: loop exit
PB: predicated region body
PF: predicated region fallthrough
CT: control target
= control target key end

     0   :  { %9 = vsyncpa [#allocation3], 0  ;;  %s2172_s0 = inlined_call_operand.vmem [shape: s32[16,1], index: 0, kind: input, shape index: {}]   ;;  %s2173_s1 = inlined_call_operand.vmem [shape: s32[16,1], index: 1, kind: input, shape index: {}]   ;;  %s2174_s2 = inlined_call_operand.hbm [shape: f32[64,128], index: 2, kind: input, shape index: {}]   ;;  %s2175_s3 = inlined_call_operand.vmem [shape: f32[16,128], index: 3, kind: input, shape index: {}]   ;;  %s2176_s4 = inlined_call_operand.hbm [shape: f32[16,256], index: 4, kind: output, shape index: {}]  }
   0x1   :  { %10 = vsyncpa [#allocation4], 0 }
   0x2   :  { %12 = vsyncpa [#allocation4 + $0x1], 0  ;;  %s1901_s15 = smov 0   ;;  %s1903_s16 = smov 0  }
   0x3   :  { %s1905_s17 = smov 0   ;;  %s1907_s18 = smov 0  }
   0x4 LB: > { %s1922_s19 = sadd.s32 4294967295, %s1866_s18   ;;  %s1355_s20 = sadd.s32 4294967294, %s1866_s18   ;;  %s1866_s18 = sphi %s1907_s18, %s2192_s18   ;;  %s1862_s17 = sphi %s1905_s17, %s2191_s17   ;;  %s1858_s16 = sphi %s1903_s16, %s2190_s16   ;;  %s1854_s15 = sphi %s1901_s15, %s2189_s15  }
   0x5   : > { %s1926_s21 = sadd.s32 1, %s1866_s18   ;;  %s119_s22 = sadd.s32 1, %s1862_s17 }
   0x6   : > { %s116_s23 = ssub.s32 %s1866_s18, %s1926_s21  ;;  %p129_p0 = scmp.ne.s32.totalorder %s1862_s17, %s1858_s16 }
   0x7   : > { %p117_p1 = scmp.eq.s32.totalorder %s116_s23, 0  ;;  %p130_p2 = scmp.eq.s32.totalorder %s1922_s19, 1 }
   0x8   : > { %p135_p3 = scmp.ne.s32.totalorder %s1858_s16, %s1854_s15  ;;  %p136_p4 = scmp.eq.s32.totalorder %s1355_s20, 1 }
   0x9   : > { %s1937_s24 = scalar_select %p117_p1, %s1862_s17, %s119_s22  }
   0xa   : > { %p1939_p5 = por %p130_p2, %p129_p0  ;;  %p1943_p6 = por %p136_p4, %p135_p3 }
   0xb   : > { %p1356_p7 = scmp.ge.s32.totalorder %s1866_s18, 1  ;;  %p143_p8 = scmp.lt.s32.totalorder %s1866_s18, 3 }
   0xc   : > { %s2180_s25 = scalar_select %p1939_p5, 1, 0 }
   0xd   : > { %s2181_s26 = scalar_select %p1943_p6, 1, 0 }
   0xe   : > { %p2177_p9 = scmp.eq.s32.totalorder %s1922_s19, 0  ;;  %p1950_p10 = pnand %p1356_p7, %p143_p8 }
   0xf   : > { %s1868_s28 = smov [#allocation2]   ;;  %s1772_s7 = scalar_lea.hbm %s2174_s2, 1024 }
  0x10   : > { %s2182_s27 = scalar_select %p1950_p10, 1, 0 }
  0x11   : > { %s155_s29 = sshll.u32 %s1868_s28, 4  ;;  %p1721_p11 = pneg %p1950_p10  ;;  %s156_s29 = int_to_ptr.vmem [resolvable:$true] %s155_s29 }
  0x12   : > { %p1773_p13 = scmp.ne.s32.totalorder %s2174_s2, %s1772_s7  ;;  %p1779_p3 = scmp.lt.u32.totalorder %s1772_s7, %s2174_s2 }
  0x13   : > { %p1958_p12 = pnand %p2177_p9, %p1721_p11 }
  0x15   : > { %p1774_p0 = pneg %p1958_p12 }
  0x17   : > { %p1775_p1 = pnand %p1774_p0, %p1773_p13 }
  0x19   : > { %p1776_p2 = pneg %p1775_p1 }
  0x1b   : > { %p1781_p4 = pnand %p1779_p3, %p1776_p2 }
  0x1d   : > { %1784 = shalt.err (!%p1781_p4)
}
  0x1e   : > { %s1785_s12 = scalar_lea.vmem %s156_s29, 1024  ;;  %p1793_p9 = scmp.lt.s32.totalorder %s156_s29, %s156_s29 }
  0x1f   : > { %p1786_p7 = scmp.ne.s32.totalorder %s156_s29, %s1785_s12  ;;  %p1794_p6 = scmp.lt.s32.totalorder %s1785_s12, %s1785_s12 }
  0x21   : > { %p1788_p8 = pnand %p1786_p7, %p1774_p0  ;;  %p1795_p5 = por %p1794_p6, %p1793_p9 }
  0x23   : > { %p1789_p11 = pneg %p1788_p8 }
  0x25   : > { %p1796_p10 = pnand %p1795_p5, %p1789_p11 }
  0x27   : > { %1799 = shalt.err (!%p1796_p10)
}
  0x28   : > { %s1869_s13 = smov 128   ;;  %s1870_s14 = smov 8  }
  0x29   : > { %1724 = dma.hbm_to_vmem [thread:$0]  (!%p1958_p12), %s2174_s2, 1024, %s156_s29, [#allocation3], %s1869_s13, %s1869_s13, %s1870_s14  }
  0x2a   : > { %p2184_p13 = scmp.ne.s32.totalorder %s2182_s27, 0 }
  0x2b   : > { %p2185_p1 = scmp.eq.s32.totalorder (!%p2184_p13), %s1922_s19, 0 }
  0x2c   : > { %188 = sbr.rel (%p2184_p13) target bundleno = 484 (0x1e4), region = 36 }
  0x33   : > { %1845 = dma.done.wait (%p2185_p1), [#allocation3], 1024   ;;  %p2186_p0 = pmov %p2185_p1 }
  0x34   : > { %p217_p5 = scmp.lt.s32.totalorder %s1922_s19, 1  ;;  %v1871_v0 = vmov 0   ;;  %v1872_v1 = vmov 0.0|0.0   ;;  %v241_v3 = vld [vmem:[#allocation2] sm:$0xff]  ;;  %v242_v4 = vld [vmem:[#allocation2 + $0x8] sm:$0xff]  ;;  %v243_v6 = vld [vmem:[#allocation2 + $0x10] sm:$0xff] }
  0x35   : > { %1847 = vsyncadd (%p2186_p0), [#allocation3], 4294966272  ;;  %1771 = vset.pattern.permute.xlu0 %v1871_v0  ;;  %1630 = vmatprep.subr.bf16.mxu0 %v1872_v1  ;;  %v254_v5 = vand.u32 4294901760, %v241_v3  ;;  %v244_v7 = vld [vmem:[#allocation2 + $0x18] sm:$0xff]  ;;  %v257_v9 = vand.u32 4294901760, %v242_v4  ;;  %v260_v10 = vand.u32 4294901760, %v243_v6 }
  0x36   : > { %s218_s23 = scalar_select %p217_p5, %s1922_s19, 1  ;;  %1606 = vmatprep.subr.bf16.mxu1 %v1872_v1  ;;  %v263_v11 = vand.u32 4294901760, %v244_v7  ;;  %v245_v12 = vld [vmem:[#allocation2 + $0x20] sm:$0xff]  ;;  %v246_v13 = vld [vmem:[#allocation2 + $0x28] sm:$0xff]  ;;  %v247_v21 = vld [vmem:[#allocation2 + $0x30] sm:$0xff]  ;;  %vm1873_vm0 = vmmov 0  }
  0x37   : > { %v1994_v14 = vsub.f32 %v241_v3, %v254_v5  ;;  %v266_v15 = vand.u32 4294901760, %v245_v12  ;;  %v269_v16 = vand.u32 4294901760, %v246_v13  ;;  %v1996_v17 = vsub.f32 %v242_v4, %v257_v9  ;;  %v248_v23 = vld [vmem:[#allocation2 + $0x38] sm:$0xff]  ;;  %s214_s12 = sand.u32 1, %s1858_s16   ;;  %s1377_s22 = sshll.u32 %s1922_s19, 8 }
  0x38   : > { %s1362_s28 = sshll.u32 %s218_s23, 3  ;;  %v1998_v18 = vsub.f32 %v243_v6, %v260_v10  ;;  %v2000_v19 = vsub.f32 %v244_v7, %v263_v11  ;;  %v2002_v20 = vpack.c.bf16 %v257_v9, %v254_v5  ;;  %v2009_v26 = vpack.c.bf16 %v263_v11, %v260_v10  ;;  %s1361_s13 = sshll.u32 %s214_s12, 4 }
  0x39   : > { %s220_s30 = scalar_lea.vmem %s2172_s0, %s1362_s28  ;;  %s224_s7 = scalar_lea.vmem %s2173_s1, %s1362_s28  ;;  %v339_v22 = vand.u32 4294901760, %v1994_v14  ;;  %v346_v24 = vand.u32 4294901760, %v1996_v17  ;;  %v1631_v25 = vpack.c.bf16 %v1996_v17, %v1994_v14  ;;  %v366_v27 = vsub.f32 %v245_v12, %v266_v15 }
  0x3a   : > { %v225_v2 = vld [vmem:[%s220_s30] sm:$0xff]  ;;  %1608 = vmatpush3.bf16.msra.mxu1 %v2002_v20  ;;  %v272_v28 = vand.u32 4294901760, %v247_v21  ;;  %v1634_v29 = vpack.c.bf16 %v2000_v19, %v1998_v18  ;;  %v373_v30 = vsub.f32 %v246_v13, %v269_v16  ;;  %v275_v31 = vand.u32 4294901760, %v248_v23  ;;  %s216_s14 = scalar_lea.vmem [#allocation5], %s1361_s13  ;;  %s2132_s27 = scalar_lea.hbm %s2176_s4, %s1377_s22 }
  0x3b   : > { %230 = vperm.xlu0 %1771, %v225_v2   ;;  %v226_v8 = vld [vmem:[%s224_s7] sm:$0xff]  ;;  %1609 = vmatprep.subr.bf16.mxu1 %v1872_v1  ;;  %v1874_v32 = vmov 0.0   ;;  %v340_v33 = vsub.f32 %v1994_v14, %v339_v22  ;;  %v347_v34 = vsub.f32 %v1996_v17, %v346_v24  ;;  %v353_v35 = vand.u32 4294901760, %v1998_v18  ;;  %s1272_s20 = sshll.u32 %s216_s14, 4  ;;  %s1258_s29 = scalar_lea.sflag [#allocation4], %s214_s12  ;;  %s2127_s20 = int_to_ptr.vmem [resolvable:$true] %s1272_s20 }
  0x3c   : > { %1632 = vmatpush3.bf16.msra.mxu0 %v1631_v25  ;;  %1504 = vmatprep.mubr.msk.f32.mxu0 %vm1873_vm0, %v1874_v32  ;;  %v360_v36 = vand.u32 4294901760, %v2000_v19  ;;  %v2022_v37 = vpack.c.bf16 %v269_v16, %v266_v15  ;;  %v1637_v42 = vpack.c.bf16 %v373_v30, %v366_v27  ;;  %v380_v43 = vsub.f32 %v247_v21, %v272_v28  ;;  %v790_v14 = vld [vmem:[%s2175_s3] sm:$0xff]  ;;  %v791_v15 = vld [vmem:[%s2175_s3 + $0x8] sm:$0xff]  ;;  %s1800_s30 = scalar_lea.vmem %s2127_s20, 256  ;;  %p2187_p9 = scmp.ne.s32.totalorder %s2180_s25, 0 }
  0x3d   : > { %1633 = vmatprep.subr.bf16.mxu0 %v1872_v1  ;;  %1466 = vmatprep.mubr.msk.f32.mxu1 %vm1873_vm0, %v1874_v32  ;;  %v341_v38 = vand.u32 4294901760, %v340_v33  ;;  %v348_v39 = vand.u32 4294901760, %v347_v34  ;;  %v354_v40 = vsub.f32 %v1998_v18, %v353_v35  ;;  %v387_v44 = vsub.f32 %v248_v23, %v275_v31  ;;  %p1801_p6 = scmp.ne.s32.totalorder %s2127_s20, %s1800_s30  ;;  %s1875_s19 = smov [#allocation5]  }
  0x3e   : > { %1611 = vmatpush3.bf16.msra.mxu1 %v2009_v26  ;;  %v361_v41 = vsub.f32 %v2000_v19, %v360_v36  ;;  %v367_v48 = vand.u32 4294901760, %v366_v27  ;;  %v2031_v49 = vpack.c.bf16 %v275_v31, %v272_v28  ;;  %v374_v50 = vand.u32 4294901760, %v373_v30  ;;  %s1804_s5 = sshll.u32 %s1875_s19, 4  ;;  %s1805_s5 = int_to_ptr.vmem [resolvable:$false] %s1804_s5 }
  0x3f   : > { %236 = vperm.xlu0 %1771, %v226_v8   ;;  %1612 = vmatprep.subr.bf16.mxu1 %v1872_v1  ;;  %v1619_v45 = vpack.c.bf16 %v348_v39, %v341_v38  ;;  %v355_v46 = vand.u32 4294901760, %v354_v40  ;;  %v1640_v53 = vpack.c.bf16 %v387_v44, %v380_v43  ;;  %v381_v56 = vand.u32 4294901760, %v380_v43  ;;  %p1802_p10 = pnand %p1801_p6, %p2187_p9  ;;  %s1806_s6 = scalar_lea.vmem %s1805_s5, 512 }
  0x40   : > { %1635 = vmatpush3.bf16.msra.mxu0 %v1634_v29  ;;  %v362_v47 = vand.u32 4294901760, %v361_v41  ;;  %v368_v52 = vsub.f32 %v366_v27, %v367_v48  ;;  %v375_v54 = vsub.f32 %v373_v30, %v374_v50  ;;  %v388_v57 = vand.u32 4294901760, %v387_v44  ;;  %p1807_p2 = scmp.lt.s32.totalorder %s2127_s20, %s1805_s5  ;;  %p1808_p3 = scmp.lt.s32.totalorder %s1806_s6, %s1800_s30 }
  0x41   : > { %1636 = vmatprep.subr.bf16.mxu0 %v1872_v1  ;;  %v382_v59 = vsub.f32 %v380_v43, %v381_v56  ;;  %v1655_v62 = vpack.c.bf16 %v346_v24, %v339_v22  ;;  %v1658_v3 = vpack.c.bf16 %v360_v36, %v353_v35  ;;  %v2038_v4 = vpack.c.bf16 %v374_v50, %v367_v48  ;;  %p1803_p12 = pneg %p1802_p10 }
  0x42   : > { %1614 = vmatpush3.bf16.msra.mxu1 %v2022_v37  ;;  %v1622_v51 = vpack.c.bf16 %v362_v47, %v355_v46  ;;  %v369_v55 = vand.u32 4294901760, %v368_v52  ;;  %v376_v58 = vand.u32 4294901760, %v375_v54  ;;  %v389_v60 = vsub.f32 %v387_v44, %v388_v57  ;;  %p1809_p4 = por %p1808_p3, %p1807_p2 }
  0x43   : > { %1615 = vmatprep.subr.bf16.mxu1 %v1872_v1  ;;  %v383_v63 = vand.u32 4294901760, %v382_v59  ;;  %v2040_v5 = vpack.c.bf16 %v388_v57, %v381_v56  ;;  %v227_v6 = vlaneseq  ;;  %vm249_vm1 = vcmask 523264  }
  0x44   : > { %1638 = vmatpush3.bf16.msra.mxu0 %v1637_v42  ;;  %v1625_v61 = vpack.c.bf16 %v376_v58, %v369_v55  ;;  %v390_v0 = vand.u32 4294901760, %v389_v60  ;;  %v797_v17 = vand.u32 4294901760, %v790_v14  ;;  %v800_v18 = vand.u32 4294901760, %v791_v15  ;;  %p1810_p7 = pnand %p1809_p4, %p1803_p12 }
  0x45   : > { %1639 = vmatprep.subr.bf16.mxu0 %v1872_v1  ;;  %v228_v7 = vand.u32 127, %v227_v6  ;;  %vm792_vm4 = vcmask 130048  }
  0x46   : > { %1617 = vmatpush3.bf16.msra.mxu1 %v2031_v49  ;;  %v1628_v2 = vpack.c.bf16 %v390_v0, %v383_v63  ;;  %v2064_v22 = vsub.f32 %v790_v14, %v797_v17  ;;  %v882_v23 = vsub.f32 %v791_v15, %v800_v18  ;;  %v1679_v33 = vpack.c.bf16 %v800_v18, %v797_v17 }
  0x47   : > { %1618 = vmatprep.subr.bf16.mxu1 %v1872_v1 }
  0x48   : > { %1641 = vmatpush3.bf16.msra.mxu0 %v1640_v53  ;;  %v876_v25 = vand.u32 4294901760, %v2064_v22  ;;  %v883_v27 = vand.u32 4294901760, %v882_v23  ;;  %v1685_v40 = vpack.c.bf16 %v882_v23, %v2064_v22 }
  0x49   : > { %1642 = vmatprep.subr.bf16.mxu0 %v1872_v1 }
  0x4a   : > { %v877_v29 = vsub.f32 %v2064_v22, %v876_v25  ;;  %v884_v30 = vsub.f32 %v882_v23, %v883_v27 }
  0x4c   : > { %v878_v34 = vand.u32 4294901760, %v877_v29  ;;  %v885_v35 = vand.u32 4294901760, %v884_v30 }
  0x4e   : > { %v1682_v38 = vpack.c.bf16 %v885_v35, %v878_v34 }
  0xba   : > { %v231_v8 = vpop.permute.xlu0 %230 }
  0xbb   : > { %vm232_vm2 = vcmp.eq.s32.totalorder %v231_v8, %v228_v7 }
  0xbc   : > { %v2043_v9 = vsel %vm232_vm2, 1.0, %v1874_v32 }
  0xbd   : > { %v251_v10 = vsel %vm249_vm1, %v2043_v9, 0 }
  0xbe   : > { %v327_v11 = vsub.f32 %v251_v10, %v251_v10  ;;  %v237_v12 = vpop.permute.xlu0 %236 }
  0xbf   : > { %vm238_vm3 = vcmp.eq.s32.totalorder %v237_v12, %v228_v7 }
  0xc0   : > { %1505 = vmatmul.mubr.f32.vlgmr.msra.gmra.mrb[0].mxu0 %v327_v11  ;;  %v328_v13 = vand.u32 4294901760, %v327_v11  ;;  %v2059_v21 = vsel %vm238_vm3, 1.0, %v1874_v32 }
  0xc1   : > { %1644 = vmatpush3.bf16.msra.mxu0 %v2002_v20  ;;  %1523 = vmatprep.mubr.msk.f32.mxu0 %vm1873_vm0, %v1874_v32  ;;  %v794_v24 = vsel %vm792_vm4, %v2059_v21, 0 }
  0xc2   : > { %1645 = vmatprep.subr.bf16.mxu0 %v1872_v1  ;;  %v329_v16 = vsub.f32 %v327_v11, %v328_v13  ;;  %v864_v28 = vsub.f32 %v794_v24, %v794_v24 }
  0xc4   : > { %v330_v19 = vand.u32 4294901760, %v329_v16  ;;  %v865_v31 = vand.u32 4294901760, %v864_v28 }
  0xc5   : > { %1647 = vmatpush3.bf16.msra.mxu0 %v2009_v26 }
  0xc6   : > { %1467 = vmatmul.mubr.f32.vlgmr.msra.gmra.mrb[0].mxu1 %v330_v19  ;;  %1648 = vmatprep.subr.bf16.mxu0 %v1872_v1  ;;  %v866_v36 = vsub.f32 %v864_v28, %v865_v31 }
  0xc7   : > { %1620 = vmatpush3.bf16.msra.mxu1 %v1619_v45  ;;  %1485 = vmatprep.mubr.msk.f32.mxu1 %vm1873_vm0, %v1874_v32 }
  0xc8   : > { %1621 = vmatprep.subr.bf16.mxu1 %v1872_v1  ;;  %v867_v39 = vand.u32 4294901760, %v866_v36 }
  0xc9   : > { %1650 = vmatpush3.bf16.msra.mxu0 %v2022_v37 }
  0xca   : > { %1651 = vmatprep.subr.bf16.mxu0 %v1872_v1 }
  0xcb   : > { %1623 = vmatpush3.bf16.msra.mxu1 %v1622_v51 }
  0xcc   : > { %1624 = vmatprep.subr.bf16.mxu1 %v1872_v1 }
  0xcd   : > { %1653 = vmatpush3.bf16.msra.mxu0 %v2031_v49 }
  0xce   : > { %1654 = vmatprep.subr.bf16.mxu0 %v1872_v1 }
  0xcf   : > { %1626 = vmatpush3.bf16.msra.mxu1 %v1625_v61 }
  0xd0   : > { %1524 = vmatmul.mubr.f32.vlgmr.msra.gmra.mrb[0].mxu0 %v328_v13  ;;  %1627 = vmatprep.subr.bf16.mxu1 %v1872_v1 }
  0xd1   : > { %1656 = vmatpush3.bf16.msra.mxu0 %v1655_v62  ;;  %1542 = vmatprep.mubr.msk.f32.mxu0 %vm1873_vm0, %v1874_v32 }
  0xd2   : > { %1657 = vmatprep.subr.bf16.mxu0 %v1872_v1 }
  0xd3   : > { %1629 = vmatpush3.bf16.msra.mxu1 %v1628_v2 }
  0xd4   : > { %1678 = vmatprep.subr.bf16.mxu1 %v1872_v1 }
  0xd5   : > { %1659 = vmatpush3.bf16.msra.mxu0 %v1658_v3 }
  0xd6   : > { %1486 = vmatmul.mubr.msk.f32.vlgmr.msra.gmra.mrb[0].mxu1 %vm249_vm1, %v2043_v9  ;;  %1660 = vmatprep.subr.bf16.mxu0 %v1872_v1 }
  0xd7   : > { %1680 = vmatpush3.bf16.msra.mxu1 %v1679_v33  ;;  %1568 = vmatprep.mubr.msk.f32.mxu1 %vm1873_vm0, %v1874_v32 }
  0xd8   : > { %1681 = vmatprep.subr.bf16.mxu1 %v1872_v1 }
  0xd9   : > { %1662 = vmatpush3.bf16.msra.mxu0 %v2038_v4 }
  0xda   : > { %1569 = vmatmul.mubr.f32.vlgmr.msra.gmra.mrb[2].mxu1 %v867_v39  ;;  %1663 = vmatprep.subr.bf16.mxu0 %v1872_v1 }
  0xdb   : > { %1683 = vmatpush3.bf16.msra.mxu1 %v1682_v38  ;;  %1575 = vmatprep.mubr.msk.f32.mxu1 %vm1873_vm0, %v1874_v32 }
  0xdc   : > { %1684 = vmatprep.subr.bf16.mxu1 %v1872_v1 }
  0xdd   : > { %1665 = vmatpush3.bf16.msra.mxu0 %v2040_v5 }
  0xde   : > { %1666 = vmatprep.subr.bf16.mxu0 %v1872_v1 }
  0xe0   : > { %1543 = vmatmul.mubr.msk.f32.vlgmr.msra.gmra.mrb[0].mxu0 %vm249_vm1, %v2043_v9 }
  0xe1   : > { %1668 = vmatpush3.bf16.msra.mxu0 %v2002_v20  ;;  %1561 = vmatprep.mubr.msk.f32.mxu0 %vm1873_vm0, %v1874_v32  ;;  %v1691_v20 = vpack.c.bf16 %v883_v27, %v876_v25 }
  0xe2   : > { %1576 = vmatmul.mubr.msk.f32.vlgmr.msra.gmra.mrb[2].mxu1 %vm792_vm4, %v2059_v21  ;;  %1669 = vmatprep.subr.bf16.mxu0 %v1872_v1 }
  0xe3   : > { %1686 = vmatpush3.bf16.msra.mxu1 %v1685_v40  ;;  %1582 = vmatprep.mubr.msk.f32.mxu1 %vm1873_vm0, %v1874_v32 }
  0xe4   : > { %1687 = vmatprep.subr.bf16.mxu1 %v1872_v1 }
  0xe5   : > { %1671 = vmatpush3.bf16.msra.mxu0 %v2009_v26 }
  0xe6   : > { %1672 = vmatprep.subr.bf16.mxu0 %v1872_v1 }
  0xe9   : > { %1674 = vmatpush3.bf16.msra.mxu0 %v2022_v37 }
  0xea   : > { %1583 = vmatmul.mubr.f32.vlgmr.msra.gmra.mrb[2].mxu1 %v864_v28  ;;  %1675 = vmatprep.subr.bf16.mxu0 %v1872_v1 }
  0xeb   : > { %1689 = vmatpush3.bf16.msra.mxu1 %v1679_v33  ;;  %1589 = vmatprep.mubr.msk.f32.mxu1 %vm1873_vm0, %v1874_v32 }
  0xec   : > { %1690 = vmatprep.subr.bf16.mxu1 %v1872_v1 }
  0xed   : > { %1677 = vmatpush3.bf16.msra.mxu0 %v2031_v49 }
  0xf0   : > { %1562 = vmatmul.mubr.msk.f32.vlgmr.msra.gmra.mrb[0].mxu0 %vm249_vm1, %v2043_v9 }
  0xf2   : > { %1590 = vmatmul.mubr.f32.vlgmr.msra.gmra.mrb[2].mxu1 %v865_v31 }
  0xf3   : > { %1692 = vmatpush3.bf16.msra.mxu1 %v1691_v20  ;;  %1596 = vmatprep.mubr.msk.f32.mxu1 %vm1873_vm0, %v1874_v32 }
  0xf4   : > { %1693 = vmatprep.subr.bf16.mxu1 %v1872_v1 }
  0xfa   : > { %1597 = vmatmul.mubr.msk.f32.vlgmr.msra.gmra.mrb[2].mxu1 %vm792_vm4, %v2059_v21 }
  0xfb   : > { %1695 = vmatpush3.bf16.msra.mxu1 %v1679_v33  ;;  %1603 = vmatprep.mubr.msk.f32.mxu1 %vm1873_vm0, %v1874_v32 }
 0x102   : > { %1604 = vmatmul.mubr.msk.f32.vlgmr.msra.gmra.mrb[2].mxu1 %vm792_vm4, %v2059_v21 }
 0x1a9   : > { %v443_v26 = vpop.f32.mrb[0].mxu1 }
 0x1aa   : > { %v1487_v37 = vpop.f32.mrb[1].mxu1 }
 0x1c3   : > { %v786_v41 = vpop.f32.mrb[0].mxu0 }
 0x1c4   : > { %v1696_v42 = vadd.f32 %v786_v41, %v443_v26  ;;  %v1563_v43 = vpop.f32.mrb[1].mxu0 }
 0x1c6   : > { %1255 = vst [vmem:[%s216_s14] sm:$0xff] %v1696_v42 }
 0x1d5   : > { %v1251_v1 = vpop.f32.mrb[2].mxu1 }
 0x1d6   : > { %1256 = vst [vmem:[%s216_s14 + $0x8] sm:$0xff] %v1251_v1  ;;  %v1605_v32 = vpop.f32.mrb[3].mxu1 }
 0x1d7   : > { %1813 = shalt.err (!%p1810_p7)
}
 0x1d8   : > { %s1814_s7 = scalar_lea.hbm %s2132_s27, 256  ;;  %s1818_s10 = scalar_lea.hbm %s2176_s4, 512 }
 0x1d9   : > { %p1815_p8 = scmp.ne.s32.totalorder %s2132_s27, %s1814_s7  ;;  %p1819_p1 = scmp.lt.u32.totalorder %s2132_s27, %s2176_s4 }
 0x1da   : > { %p1820_p0 = scmp.lt.u32.totalorder %s1818_s10, %s1814_s7  ;;  %p1822_p6 = scmp.lt.u32.totalorder %s1814_s7, %s2132_s27 }
 0x1db   : > { %p1816_p11 = pnand %p1815_p8, %p2187_p9 }
 0x1dc   : > { %p1821_p5 = por %p1820_p0, %p1819_p1 }
 0x1dd   : > { %p1817_p13 = pneg %p1816_p11 }
 0x1de   : > { %p1823_p10 = por %p1822_p6, %p1821_p5 }
 0x1e0   : > { %p1824_p12 = pnand %p1823_p10, %p1817_p13 }
 0x1e2   : > { %1827 = shalt.err (!%p1824_p12)
}
 0x1e3   : > { %1719 = dma.vmem_to_hbm [thread:$0]  (%p2187_p9), %s2127_s20, 256, %s2132_s27, %s1258_s29  }
 0x1e4 PF: > { %p1731_p2 = scmp.ge.s32.totalorder %s1866_s18, 2  ;;  %s1284_s13 = sand.u32 1, %s1854_s15  }
 0x1e5   : > { %p2188_p3 = scmp.ne.s32.totalorder %s2181_s26, 0  ;;  %s1285_s14 = scalar_lea.sflag [#allocation4], %s1284_s13 }
 0x1e7   : > { %p1726_p4 = pnand %p1731_p2, %p2188_p3 }
 0x1e9   : > { %1849 = dma.done.wait (!%p1726_p4), %s1285_s14, 256  }
 0x1ea   : > { %1851 = vsyncadd (!%p1726_p4), %s1285_s14, 4294967040  ;;  %p15_p7 = scmp.ge.s32.totalorder %s1926_s21, 4   ;;  %s2189_s15 = smov %s1858_s16 }
 0x1eb   : > { %s2190_s16 = smov %s1862_s17  ;;  %s2191_s17 = smov %s1937_s24 }
 0x1ec   : > { %s2192_s18 = smov %s1926_s21  ;;  %17 = sbr.rel (!%p15_p7) target bundleno = 4 (0x4), region = 79 }
 0x1f3   :  { %1290 = vsyncpa [#allocation3], 1 }
 0x1f4   :  { %1292 = vsyncpa [#allocation3 + $0x1], 1 }
 0x1f5   :  { %1293 = vsyncpa [#allocation4], 1 }
 0x1f6   :  { %1295 = vsyncpa [#allocation4 + $0x1], 1 }

</bundles_post_ra>
